<compile_context>
chip_gen: v6e
topology: v6e:2x2x1
jax: 0.10.0
libtpu: 0.0.40
codegen_flags: <defaults>
</compile_context>

<pallas_src>
import functools

import numpy as np
import jax
import jax.numpy as jnp
from jax.experimental import pallas as pl
from jax.experimental.pallas import tpu as pltpu

_LANES = 128


def _round_up(x, m):
    return ((x + m - 1) // m) * m


# ----------------------------- Pallas kernels --------------------------------
def _accumulate_chunks(x_ref, num_chunks, chunk):
    """Single streaming pass: per-lane sum and sum-of-squares, f32 accumulators."""
    c0 = x_ref[:, 0:chunk].astype(jnp.float32)
    s = c0
    sq = c0 * c0
    for k in range(1, num_chunks):          # static unrolled loop (few chunks)
        c = x_ref[:, k * chunk:(k + 1) * chunk].astype(jnp.float32)
        s = s + c
        sq = sq + c * c
    return s, sq


def _fold_groups(a, groups):
    """Sum the `groups` D-lane groups of a (TB, 128) array via XLU rolls."""
    shift = _LANES // 2
    g = groups
    while g > 1:
        a = a + pltpu.roll(a, shift=shift, axis=1)
        g //= 2
        shift //= 2
    return a


def _fm_reduced_lane_kernel(x_ref, o_ref, *, num_chunks, groups):
    # x_ref: (TB, F*D) native dtype, lane-dense; o_ref: (TB, 1) f32.
    s, sq = _accumulate_chunks(x_ref, num_chunks, _LANES)
    # sum-of-squares: full reduction over all F*D lanes -> no fold needed.
    sos = jnp.sum(sq, axis=1, keepdims=True)
    # square-of-sum: fold the 128/D lane groups of the field-sum, then square.
    s = _fold_groups(s, groups)
    sqs = jnp.sum(s * s, axis=1, keepdims=True) * (1.0 / groups)
    o_ref[...] = 0.5 * (sqs - sos)


def _fm_unreduced_lane_kernel(x_ref, o_ref, *, num_chunks, groups, embed_dim):
    # x_ref: (TB, F*D); o_ref: (TB, D) f32.
    s, sq = _accumulate_chunks(x_ref, num_chunks, _LANES)
    s = _fold_groups(s, groups)
    sq = _fold_groups(sq, groups)
    o_ref[...] = (0.5 * (s * s - sq))[:, 0:embed_dim]


def _fm_generic_kernel(x_ref, o_ref, *, num_fields, embed_dim, reduce_sum):
    # Fallback for layouts the lane-aligned path cannot express
    # (D does not divide 128, or F*D not a multiple of 128).
    s, sq = _accumulate_chunks(x_ref, num_fields, embed_dim)
    ix = s * s - sq
    if reduce_sum:
        o_ref[...] = 0.5 * jnp.sum(ix, axis=1, keepdims=True)
    else:
        o_ref[...] = 0.5 * ix


# ------------------------------- wrapper --------------------------------------
def fm_pallas(x, *, reduce_sum=True, block_rows=4096):
    """FactorizationMachine forward.

    x: (B, F, D) float -> (B, 1) float32 if reduce_sum else (B, D) float32.
    """
    B, F, D = x.shape
    FD = F * D
    # Lane-dense contiguous view (free reshape); stream native dtype.
    x2 = x.reshape(B, FD)
    itemsize = jnp.dtype(x2.dtype).itemsize

    # ---- tile selection: function of F*D, itemsize and per-generation VMEM ----
    try:
        vmem_cap = int(pltpu.get_tpu_info().vmem_capacity_bytes)
    except Exception:  # pragma: no cover - conservative default (v7x per-TC)
        vmem_cap = 64 << 20
    out_cols = 1 if reduce_sum else D
    # ~25% of physical VMEM for the double-buffered pipeline, kept within the
    # 16 MiB default scoped limit when possible (v5e-friendly).
    budget = min(vmem_cap // 4, 16 << 20)
    per_row = 2 * FD * itemsize + 2 * max(out_cols, _LANES) * 4
    tb = min(block_rows, max(budget // per_row, 8))
    tb = max(8, (tb // 8) * 8)
    tb = min(tb, _round_up(B, 8))          # never oversize the tile vs. B

    grid = (pl.cdiv(B, tb),)               # partial last block; no wrapper pad

    lane_path = (D <= _LANES) and (_LANES % D == 0) and (FD % _LANES == 0)
    if lane_path:
        groups = _LANES // D
        num_chunks = FD // _LANES
        if reduce_sum:
            kernel = functools.partial(_fm_reduced_lane_kernel,
                                       num_chunks=num_chunks, groups=groups)
        else:
            kernel = functools.partial(_fm_unreduced_lane_kernel,
                                       num_chunks=num_chunks, groups=groups,
                                       embed_dim=D)
    else:
        kernel = functools.partial(_fm_generic_kernel, num_fields=F,
                                   embed_dim=D, reduce_sum=reduce_sum)

    cp_kwargs = dict(dimension_semantics=("parallel",))   # megacore on v7x
    vmem_bytes = tb * per_row + (2 << 20)
    if vmem_bytes > (16 << 20):
        # Only raise the scoped limit when needed; never request above physical.
        cp_kwargs["vmem_limit_bytes"] = int(min(vmem_bytes + (4 << 20), vmem_cap))

    out = pl.pallas_call(
        kernel,
        out_shape=jax.ShapeDtypeStruct((B, out_cols), jnp.float32),
        grid=grid,
        in_specs=[pl.BlockSpec((tb, FD), lambda i: (i, 0))],
        out_specs=pl.BlockSpec((tb, out_cols), lambda i: (i, 0)),
        compiler_params=pltpu.CompilerParams(**cp_kwargs),
    )(x2)
    return out


class FactorizationMachinePallas:
    """JAX/Pallas port of the PyTorch FactorizationMachine module."""

    def __init__(self, reduce_sum=True):
        self.reduce_sum = reduce_sum

    def __call__(self, x):
        if isinstance(x, (list, tuple)):
            if self.reduce_sum:
                # sum over the concatenated interaction dim
                #   == sum of the per-tensor reduced interactions
                out = None
                for xx in x:
                    o = fm_pallas(xx, reduce_sum=True)
                    out = o if out is None else out + o
                return out
            return jnp.concatenate(
                [fm_pallas(xx, reduce_sum=False) for xx in x], axis=1)
        return fm_pallas(x, reduce_sum=self.reduce_sum)


# ------------------------------ reference -------------------------------------
def reference_fm(x, reduce_sum=True):
    if isinstance(x, (list, tuple)):
        parts = [jnp.sum(xx, axis=1) ** 2 - jnp.sum(xx ** 2, axis=1) for xx in x]
        ix = jnp.concatenate(parts, axis=1)
    else:
        ix = jnp.sum(x, axis=1) ** 2 - jnp.sum(x ** 2, axis=1)
    if reduce_sum:
        ix = jnp.sum(ix, axis=1, keepdims=True)
    return 0.5 * ix


if __name__ == "__main__":
    key = jax.random.PRNGKey(0)
    ks = jax.random.split(key, 6)

    # (batch, num_fields, embed_dim) — DeepFM-style small shapes
    B, F, D = 2, 8, 32
    x = jax.random.normal(ks[0], (B, F, D), dtype=jnp.float32)
    fm = FactorizationMachinePallas(reduce_sum=True)
    out = jax.block_until_ready(fm(x))
    assert out.shape == (B, 1)
    np.testing.assert_allclose(np.asarray(out), np.asarray(reference_fm(x, True)),
                               rtol=1e-4, atol=1e-3)

    # grid > 1 plus a partial last block (B not a multiple of the row tile)
    B2 = 300
    x_big = jax.random.normal(ks[1], (B2, F, D), dtype=jnp.float32)
    out_big = jax.block_until_ready(fm_pallas(x_big, reduce_sum=True, block_rows=64))
    assert out_big.shape == (B2, 1)
    np.testing.assert_allclose(np.asarray(out_big),
                               np.asarray(reference_fm(x_big, True)),
                               rtol=1e-4, atol=1e-3)

    # reduce_sum=False path (lane-aligned, per-d output)
    out_nr = jax.block_until_ready(fm_pallas(x, reduce_sum=False))
    assert out_nr.shape == (B, D)
    np.testing.assert_allclose(np.asarray(out_nr),
                               np.asarray(reference_fm(x, False)),
                               rtol=1e-4, atol=1e-3)

    # native bf16 streaming (no wrapper upcast); f32 accumulation in-kernel
    x_bf = jax.random.normal(ks[2], (64, F, D), dtype=jnp.bfloat16)
    out_bf = jax.block_until_ready(fm_pallas(x_bf, reduce_sum=True))
    np.testing.assert_allclose(
        np.asarray(out_bf),
        np.asarray(reference_fm(x_bf.astype(jnp.float32), True)),
        rtol=2e-2, atol=2e-2)

    # generic fallback path (F*D not a multiple of 128)
    x_g = jax.random.normal(ks[3], (16, 5, 16), dtype=jnp.float32)
    out_g = jax.block_until_ready(fm_pallas(x_g, reduce_sum=True))
    np.testing.assert_allclose(np.asarray(out_g),
                               np.asarray(reference_fm(x_g, True)),
                               rtol=1e-4, atol=1e-3)

    # list input (module's concat / summed-reduction semantics)
    xs = [x, jax.random.normal(ks[4], (B, 4, D), dtype=jnp.float32)]
    out_list = jax.block_until_ready(fm(xs))
    np.testing.assert_allclose(np.asarray(out_list),
                               np.asarray(reference_fm(xs, True)),
                               rtol=1e-4, atol=1e-3)

    # NOTE: benchmarking must use realistic B (tens of thousands) and xprof
    # min-of-N timings; these tiny shapes are correctness-only.
    print("KERNEL_OK")
</pallas_src>

<mosaic_0001>
module attributes {stable_mosaic.version = 11 : i64} {
  func.func @_fm_reduced_lane_kernel(%arg0: i32, %arg1: memref<8x256xf32, #tpu.memory_space<vmem>>, %arg2: memref<8x1xf32, #tpu.memory_space<vmem>>) attributes {dimension_semantics = [#tpu.dimension_semantics<parallel>], iteration_bounds = array<i64: 1>, scalar_prefetch = 0 : i64, scratch_operands = 0 : i64, tpu.core_type = #tpu.core_type<tc>, window_params = [{transform_indices = @transform_0, window_bounds = array<i64: 8, 256>}, {transform_indices = @transform_1, window_bounds = array<i64: 8, 1>}]} {
    %c0 = arith.constant 0 : index
    %c0_0 = arith.constant 0 : index
    %0 = vector.load %arg1[%c0, %c0_0] : memref<8x256xf32, #tpu.memory_space<vmem>>, vector<8x128xf32>
    %1 = arith.mulf %0, %0 : vector<8x128xf32>
    %c0_1 = arith.constant 0 : index
    %c128 = arith.constant 128 : index
    %2 = vector.load %arg1[%c0_1, %c128] : memref<8x256xf32, #tpu.memory_space<vmem>>, vector<8x128xf32>
    %3 = arith.addf %0, %2 : vector<8x128xf32>
    %4 = arith.mulf %2, %2 : vector<8x128xf32>
    %5 = arith.addf %1, %4 : vector<8x128xf32>
    %cst = arith.constant dense<0.000000e+00> : vector<8xf32>
    %6 = vector.multi_reduction <add>, %5, %cst [1] : vector<8x128xf32> to vector<8xf32>
    %7 = vector.shape_cast %6 : vector<8xf32> to vector<8x1xf32>
    %c64_i32 = arith.constant 64 : i32
    %8 = tpu.dynamic_rotate %3 by %c64_i32 dim 1 : vector<8x128xf32>, i32 -> vector<8x128xf32>
    %9 = arith.addf %3, %8 : vector<8x128xf32>
    %c32_i32 = arith.constant 32 : i32
    %10 = tpu.dynamic_rotate %9 by %c32_i32 dim 1 : vector<8x128xf32>, i32 -> vector<8x128xf32>
    %11 = arith.addf %9, %10 : vector<8x128xf32>
    %12 = arith.mulf %11, %11 : vector<8x128xf32>
    %cst_2 = arith.constant dense<0.000000e+00> : vector<8xf32>
    %13 = vector.multi_reduction <add>, %12, %cst_2 [1] : vector<8x128xf32> to vector<8xf32>
    %14 = vector.shape_cast %13 : vector<8xf32> to vector<8x1xf32>
    %cst_3 = arith.constant 2.500000e-01 : f32
    %15 = vector.broadcast %cst_3 : f32 to vector<8x1xf32>
    %16 = arith.mulf %14, %15 : vector<8x1xf32>
    %17 = arith.subf %16, %7 : vector<8x1xf32>
    %cst_4 = arith.constant 5.000000e-01 : f32
    %18 = vector.broadcast %cst_4 : f32 to vector<8x1xf32>
    %19 = arith.mulf %18, %17 : vector<8x1xf32>
    %c0_5 = arith.constant 0 : index
    %c0_6 = arith.constant 0 : index
    %20 = vector.load %arg2[%c0_5, %c0_6] : memref<8x1xf32, #tpu.memory_space<vmem>>, vector<8x1xf32>
    tpu.vector_store %arg2[%c0_5, %c0_6], %19 {strides = array<i32>} : memref<8x1xf32, #tpu.memory_space<vmem>>, vector<8x1xf32>,
    return
  }
  func.func @transform_0(%arg0: i32) -> (i32, i32) {
    %c0_i32 = arith.constant 0 : i32
    %c0_i32_0 = arith.constant 0 : i32
    return %arg0, %c0_i32 : i32, i32
  }
  func.func @transform_1(%arg0: i32) -> (i32, i32) {
    %c0_i32 = arith.constant 0 : i32
    %c0_i32_0 = arith.constant 0 : i32
    return %arg0, %c0_i32 : i32, i32
  }
}

</mosaic_0001>

<bundles_post_ra>
// kernel: tpu_custom_call.1
= control target key start
LH: loop header
LB: loop body
LE: loop exit
PB: predicated region body
PF: predicated region fallthrough
CT: control target
= control target key end

     0   :  { %6 = vsyncpa [#allocation3], 0  ;;  %s293_s0 = inlined_call_operand.hbm [shape: f32[2,256], index: 0, kind: input, shape index: {}]   ;;  %s294_s1 = inlined_call_operand.vmem [shape: f32[2,1], index: 1, kind: output, shape index: {}]  }
   0x1   :  { %11 = vsyncadd [#allocation3], 192  ;;  %s272_s6 = smov [#allocation2]  }
   0x2   :  { %s12_s7 = sshll.u32 %s272_s6, 4  ;;  %s13_s7 = int_to_ptr.vmem [resolvable:$true] %s12_s7 }
   0x3   :  { %s258_s8 = scalar_lea.vmem %s13_s7, 64  ;;  %s262_s9 = scalar_lea.vmem %s13_s7, 256 }
   0x4   :  { %p259_p0 = scmp.ne.s32.totalorder %s13_s7, %s258_s8  ;;  %p263_p1 = scmp.lt.s32.totalorder %s13_s7, %s13_s7 }
   0x5   :  { %p264_p2 = scmp.lt.s32.totalorder %s262_s9, %s258_s8 }
   0x7   :  { %p265_p3 = por %p264_p2, %p263_p1 }
   0x9   :  { %p266_p4 = pnand %p265_p3, %p259_p0 }
   0xb   :  { %269 = shalt.err (!%p266_p4)
}
   0xc   :  { %s273_s10 = smov 64   ;;  %s274_s11 = smov 4  }
   0xd   :  { %18 = dma.hbm_to_vmem [thread:$0]  %s293_s0, 64, %s13_s7, [#allocation3], %s273_s10, %s273_s10, %s274_s11  }
   0xe   :  { %270 = dma.done.wait [#allocation3], 256  }
   0xf   :  { %271 = vsyncadd [#allocation3], 4294967040  ;;  %v275_v0 = vmov 1983009808   ;;  %v55_v2 = vlaneseq  ;;  %v22_v5 = vld [vmem:[#allocation2] sm:$0x3] }
  0x10   :  { %v53_v1 = vunpack.c.l.s4 %v275_v0  ;;  %v23_v6 = vld [vmem:[#allocation2 + $0x4] sm:$0x3]  ;;  %v24_v7 = vld [vmem:[#allocation2 + $0x8] sm:$0x3]  ;;  %v25_v8 = vld [vmem:[#allocation2 + $0xc] sm:$0x3]  ;;  %v26_v37 = vmul.f32 %v22_v5, %v22_v5 }
  0x11   :  { %v56_v4 = vshrl.u32 %v55_v2, 7  ;;  %v30_v9 = vld [vmem:[#allocation2 + $0x2] sm:$0x3]  ;;  %v31_v10 = vld [vmem:[#allocation2 + $0x6] sm:$0x3]  ;;  %v27_v34 = vmul.f32 %v23_v6, %v23_v6  ;;  %v28_v35 = vmul.f32 %v24_v7, %v24_v7  ;;  %v29_v36 = vmul.f32 %v25_v8, %v25_v8  ;;  %s276_s0 = smov 32  }
  0x12   :  { %v54_v3 = vunpack.c.0.s8 %v53_v1  ;;  %v32_v11 = vld [vmem:[#allocation2 + $0xa] sm:$0x3]  ;;  %v33_v12 = vld [vmem:[#allocation2 + $0xe] sm:$0x3]  ;;  %v34_v13 = vadd.f32 %v30_v9, %v22_v5  ;;  %v35_v14 = vadd.f32 %v31_v10, %v23_v6  ;;  %v38_v39 = vmul.f32 %v30_v9, %v30_v9 }
  0x13   :  { %v36_v16 = vadd.f32 %v32_v11, %v24_v7  ;;  %v37_v17 = vadd.f32 %v33_v12, %v25_v8  ;;  %v39_v40 = vmul.f32 %v31_v10, %v31_v10  ;;  %v40_v41 = vmul.f32 %v32_v11, %v32_v11 }
  0x14   :  { %v57_v15 = vsub.s32 %v54_v3, %v56_v4  ;;  %v74_v18 = vcombine.low %v34_v13, %v35_v14  ;;  %v41_v42 = vmul.f32 %v33_v12, %v33_v12  ;;  %v42_v46 = vadd.f32 %v38_v39, %v26_v37 }
  0x15   :  { %v75_v19 = vcombine.low %v36_v16, %v37_v17  ;;  %v43_v47 = vadd.f32 %v39_v40, %v27_v34  ;;  %v44_v48 = vadd.f32 %v40_v41, %v28_v35  ;;  %vm201_vm0 = vcmask 7168  }
  0x16   :  { %v82_v20 = vrot.slane %v74_v18, %v57_v15  ;;  %v45_v49 = vadd.f32 %v41_v42, %v29_v36 }
  0x17   :  { %v89_v21 = vrot.slane %v75_v19, %v57_v15  ;;  %v50_v50 = vcombine.low %v42_v46, %v43_v47 }
  0x18   :  { %v51_v51 = vcombine.low %v44_v48, %v45_v49 }
  0x19   :  { %v90_v22 = vcombine.low %v82_v20, %v89_v21  ;;  %v58_v52 = vrot.slane %v50_v50, %v57_v15 }
  0x1a   :  { %v65_v53 = vrot.slane %v51_v51, %v57_v15 }
  0x1b   :  { %92 = vrot.lane.b32.xlu0 %v90_v22, %s273_s10 }
  0x1c   :  { %v66_v54 = vcombine.low %v58_v52, %v65_v53 }
  0x8d   :  { %v93_v23 = vpop.permute.xlu0 %92 }
  0x8e   :  { %v95_v24 = vcombine.high %v93_v23, %v93_v23  ;;  %v102_v25 = vrot.slane %v93_v23, %v57_v15 }
  0x90   :  { %v109_v26 = vrot.slane %v95_v24, %v57_v15  ;;  %v110_v27 = vcombine.high %v102_v25, %v102_v25  ;;  %v116_v29 = vadd.f32 %v102_v25, %v34_v13 }
  0x92   :  { %v111_v28 = vcombine.high %v109_v26, %v109_v26  ;;  %v117_v30 = vadd.f32 %v110_v27, %v35_v14  ;;  %v118_v31 = vadd.f32 %v109_v26, %v36_v16 }
  0x94   :  { %v119_v32 = vadd.f32 %v111_v28, %v37_v17  ;;  %v124_v33 = vcombine.low %v116_v29, %v117_v30 }
  0x96   :  { %v125_v38 = vcombine.low %v118_v31, %v119_v32  ;;  %v132_v43 = vrot.slane %v124_v33, %v57_v15 }
  0x98   :  { %v139_v44 = vrot.slane %v125_v38, %v57_v15 }
  0x9a   :  { %v140_v45 = vcombine.low %v132_v43, %v139_v44 }
  0x9c   :  { %142 = vrot.lane.b32.xlu0 %v140_v45, %s276_s0 }
 0x10e   :  { %v143_v55 = vpop.permute.xlu0 %142 }
 0x10f   :  { %v145_v56 = vcombine.high %v143_v55, %v143_v55  ;;  %v152_v57 = vrot.slane %v143_v55, %v57_v15 }
 0x111   :  { %v159_v58 = vrot.slane %v145_v56, %v57_v15  ;;  %v160_v59 = vcombine.high %v152_v57, %v152_v57  ;;  %v166_v60 = vadd.f32 %v152_v57, %v116_v29 }
 0x113   :  { %v161_v61 = vcombine.high %v159_v58, %v159_v58  ;;  %v167_v62 = vadd.f32 %v160_v59, %v117_v30  ;;  %v168_v63 = vadd.f32 %v159_v58, %v118_v31  ;;  %v170_v0 = vmul.f32 %v166_v60, %v166_v60 }
 0x115   :  { %v171_v1 = vmul.f32 %v167_v62, %v167_v62  ;;  %v169_v2 = vadd.f32 %v161_v61, %v119_v32  ;;  %v172_v3 = vmul.f32 %v168_v63, %v168_v63 }
 0x117   :  { %v173_v4 = vmul.f32 %v169_v2, %v169_v2  ;;  %v178_v5 = vcombine.low %v170_v0, %v171_v1 }
 0x119   :  { %v179_v6 = vcombine.low %v172_v3, %v173_v4  ;;  %v186_v7 = vrot.slane %v178_v5, %v57_v15 }
 0x11b   :  { %v193_v8 = vrot.slane %v179_v6, %v57_v15 }
 0x11d   :  { %v194_v9 = vcombine.low %v186_v7, %v193_v8 }
 0x11f   :  { %196 = vadd.xlane.f32.xlu1 %v194_v9 }
 0x123   :  { %68 = vadd.xlane.f32.xlu1 %v66_v54 }
 0x1a8   :  { %v197_v10 = vpop.xlane.xlu1 %196 }
 0x1a9   :  { %v198_v11 = vmul.f32 0.25, %v197_v10 }
 0x1ac   :  { %v69_v12 = vpop.xlane.xlu1 %68 }
 0x1ad   :  { %v199_v13 = vsub.f32 %v198_v11, %v69_v12 }
 0x1af   :  { %v200_v14 = vmul.f32 0.5, %v199_v13 }
 0x1b1   :  { %202 = vst.msk [vmem:[#allocation4] sm:$0xff] %vm201_vm0, %v200_v14 }
 0x1b8   :  { %v221_v16 = vld [vmem:[#allocation4] sm:$0x3] }
 0x1b9   :  { %222 = vst [vmem:[%s294_s1] sm:$0x3] %v221_v16 }
 0x1ba   :  { %240 = vsyncpa [#allocation3], 1 }

</bundles_post_ra>
